<compile_context>
chip_gen: v6e
topology: v6e:2x2x1
jax: 0.10.0
libtpu: 0.0.40
codegen_flags: <defaults>
</compile_context>

<pallas_src>
import functools

import numpy as np

import jax
import jax.numpy as jnp
from jax import lax
from jax.experimental import pallas as pl
from jax.experimental.pallas import tpu as pltpu


COMPUTE_DTYPE = jnp.bfloat16            # MXU-native operand dtype on v5e/v6e/v7x
_NT_DIMS = (((1,), (1,)), ((), ()))     # contract last dims: (C,K) x (B,K) -> (C,B)
_VMEM = pl.BlockSpec(memory_space=pltpu.MemorySpace.VMEM)

# Batch-grid gate: below this the ~0.35us/step grid overhead costs more than it
# saves; above it the batch is tiled so both v7x TensorCores work and per-step
# VMEM stays tiny (weights are pinned, not tiled).
_MIN_GRID_BATCH = 256
_BATCH_TILE = 128


def _pick_batch_tile(batch):
    if batch >= _MIN_GRID_BATCH and batch % _BATCH_TILE == 0:
        return _BATCH_TILE
    return None


# -----------------------------------------------------------------------------
# Pallas kernels
# -----------------------------------------------------------------------------
def _actor_kernel(obs_ref, w1_ref, b1_ref, w2_ref, b2_ref, w3_ref, b3_ref, out_ref):
    """Fused 3-layer MLP, ReLU hidden, tanh output.  bf16 MXU, f32 accumulate."""
    x = obs_ref[...].astype(COMPUTE_DTYPE)
    h1 = jnp.maximum(
        jnp.dot(x, w1_ref[...], preferred_element_type=jnp.float32) + b1_ref[...], 0.0
    )
    h2 = jnp.maximum(
        jnp.dot(h1.astype(COMPUTE_DTYPE), w2_ref[...],
                preferred_element_type=jnp.float32) + b2_ref[...], 0.0
    )
    a = jnp.tanh(
        jnp.dot(h2.astype(COMPUTE_DTYPE), w3_ref[...],
                preferred_element_type=jnp.float32) + b3_ref[...]
    )
    out_ref[...] = a.astype(out_ref.dtype)


def _packed_critic_mlp(obs, act, w1o, w1a, b1, w2, b2, w3t, b3t):
    """All critics in one shot via lane-packed / block-diagonal weights.

    obs:(B,obs_dim) act:(B,act_dim) -> q:(C, B)  [lane-dense, batch in lanes].
    Layer 1 avoids the obs/act concat by summing two matmuls.  The last layer
    uses a trans-B dot_general with a pre-transposed w3 (C, C*H) so the kernel
    emits the (C, B) block directly — no transpose op, no wrapper q.T.
    """
    h1 = jnp.maximum(
        jnp.dot(obs.astype(COMPUTE_DTYPE), w1o, preferred_element_type=jnp.float32)
        + jnp.dot(act.astype(COMPUTE_DTYPE), w1a, preferred_element_type=jnp.float32)
        + b1,
        0.0,
    )
    h2 = jnp.maximum(
        jnp.dot(h1.astype(COMPUTE_DTYPE), w2, preferred_element_type=jnp.float32) + b2,
        0.0,
    )
    qT = lax.dot_general(w3t, h2.astype(COMPUTE_DTYPE), _NT_DIMS,
                         preferred_element_type=jnp.float32) + b3t
    return qT  # (C, B)


def _critic_kernel(obs_ref, act_ref, w1o_ref, w1a_ref, b1_ref, w2_ref, b2_ref,
                   w3t_ref, b3t_ref, q_ref):
    qT = _packed_critic_mlp(
        obs_ref[...], act_ref[...],
        w1o_ref[...], w1a_ref[...], b1_ref[...],
        w2_ref[...], b2_ref[...],
        w3t_ref[...], b3t_ref[...],
    )
    q_ref[...] = qT.astype(q_ref.dtype)          # (C, batch_tile) lane-dense


def _fused_actor_critic_kernel(
    obs_ref, w1cat_ref, b1cat_ref,
    cw1a_ref, cw2_ref, cb2_ref, cw3t_ref, cb3t_ref,
    aw2_ref, ab2_ref, aw3_ref, ab3_ref,
    act_out_ref, q_out_ref, *, split,
):
    """Actor MLP + packed (critics||target_critics) ensemble in one kernel.

    Layer 1 of the critic obs-path and of the actor share one matmul:
    z1 = obs @ [cw1_obs | aw1] + [cb1 | ab1]; lanes [:split] feed the critics
    (split = 2C*H, a tile boundary), lanes [split:] feed the actor.
    """
    x = obs_ref[...].astype(COMPUTE_DTYPE)
    z1 = jnp.dot(x, w1cat_ref[...], preferred_element_type=jnp.float32) + b1cat_ref[...]

    # Actor branch (lanes [split:], tile-aligned start).
    h1a = jnp.maximum(z1[:, split:], 0.0)
    h2a = jnp.maximum(
        jnp.dot(h1a.astype(COMPUTE_DTYPE), aw2_ref[...],
                preferred_element_type=jnp.float32) + ab2_ref[...], 0.0
    )
    a = jnp.tanh(
        jnp.dot(h2a.astype(COMPUTE_DTYPE), aw3_ref[...],
                preferred_element_type=jnp.float32) + ab3_ref[...]
    )
    act_out_ref[...] = a.astype(act_out_ref.dtype)

    # Critic branch: obs contribution + bias already live in lanes [:split].
    c1 = jnp.maximum(
        z1[:, :split]
        + jnp.dot(a.astype(COMPUTE_DTYPE), cw1a_ref[...],
                  preferred_element_type=jnp.float32),
        0.0,
    )
    c2 = jnp.maximum(
        jnp.dot(c1.astype(COMPUTE_DTYPE), cw2_ref[...],
                preferred_element_type=jnp.float32) + cb2_ref[...], 0.0
    )
    qT = lax.dot_general(cw3t_ref[...], c2.astype(COMPUTE_DTYPE), _NT_DIMS,
                         preferred_element_type=jnp.float32) + cb3t_ref[...]
    q_out_ref[...] = qT.astype(q_out_ref.dtype)  # (2C, batch_tile) lane-dense


# -----------------------------------------------------------------------------
# Wrappers
# -----------------------------------------------------------------------------
def actor_forward(obs, actor_params):
    """obs: (B, obs_dim) -> actions: (B, action_dim)."""
    batch = obs.shape[0]
    action_dim = actor_params["w3"].shape[1]
    return pl.pallas_call(
        _actor_kernel,
        out_shape=jax.ShapeDtypeStruct((batch, action_dim), jnp.float32),
        in_specs=[_VMEM] * 7,
        out_specs=_VMEM,
    )(
        obs,
        actor_params["w1"], actor_params["b1"],
        actor_params["w2"], actor_params["b2"],
        actor_params["w3"], actor_params["b3"],
    )


def packed_critic_forward(obs, actions, packed, *, batch_tile=None):
    """(B, obs_dim), (B, act_dim) -> (C, B) for the packed critic ensemble."""
    batch, obs_dim = obs.shape
    act_dim = actions.shape[1]
    num_q = packed["w3t"].shape[0]
    weight_args = (packed["w1_obs"], packed["w1_act"], packed["b1"],
                   packed["w2"], packed["b2"], packed["w3t"], packed["b3t"])
    out_shape = jax.ShapeDtypeStruct((num_q, batch), jnp.float32)

    if batch_tile is None:
        batch_tile = _pick_batch_tile(batch)

    if batch_tile is None:
        # Small batch: gridless, everything in VMEM, single step.
        return pl.pallas_call(
            _critic_kernel,
            out_shape=out_shape,
            in_specs=[_VMEM] * 9,
            out_specs=_VMEM,
        )(obs, actions, *weight_args)

    # Large batch: tile the batch (parallel -> v7x megacore), pin weights.
    grid = (batch // batch_tile,)
    in_specs = (
        [pl.BlockSpec((batch_tile, obs_dim), lambda i: (i, 0)),
         pl.BlockSpec((batch_tile, act_dim), lambda i: (i, 0))]
        + [pl.BlockSpec(w.shape, lambda i: (0, 0)) for w in weight_args]
    )
    out_specs = pl.BlockSpec((num_q, batch_tile), lambda i: (0, i))
    return pl.pallas_call(
        _critic_kernel,
        out_shape=out_shape,
        grid=grid,
        in_specs=in_specs,
        out_specs=out_specs,
        compiler_params=pltpu.CompilerParams(dimension_semantics=("parallel",)),
    )(obs, actions, *weight_args)


def fused_actor_critic_forward(obs, fused_params, *, batch_tile=None):
    """One pallas_call: actions (B, A) and packed Q-values (2C, B)."""
    batch, obs_dim = obs.shape
    action_dim = fused_params["aw3"].shape[1]
    num_q = fused_params["cw3t"].shape[0]
    split = fused_params["cw2"].shape[0]        # 2C*H — critic lane width
    args = (fused_params["w1cat"], fused_params["b1cat"],
            fused_params["cw1a"], fused_params["cw2"], fused_params["cb2"],
            fused_params["cw3t"], fused_params["cb3t"],
            fused_params["aw2"], fused_params["ab2"],
            fused_params["aw3"], fused_params["ab3"])
    kernel = functools.partial(_fused_actor_critic_kernel, split=split)
    out_shapes = (
        jax.ShapeDtypeStruct((batch, action_dim), jnp.float32),
        jax.ShapeDtypeStruct((num_q, batch), jnp.float32),
    )

    if batch_tile is None:
        batch_tile = _pick_batch_tile(batch)

    if batch_tile is None:
        return pl.pallas_call(
            kernel,
            out_shape=out_shapes,
            in_specs=[_VMEM] * 12,
            out_specs=(_VMEM, _VMEM),
        )(obs, *args)

    grid = (batch // batch_tile,)
    in_specs = (
        [pl.BlockSpec((batch_tile, obs_dim), lambda i: (i, 0))]
        + [pl.BlockSpec(w.shape, lambda i: (0, 0)) for w in args]
    )
    out_specs = (
        pl.BlockSpec((batch_tile, action_dim), lambda i: (i, 0)),
        pl.BlockSpec((num_q, batch_tile), lambda i: (0, i)),
    )
    return pl.pallas_call(
        kernel,
        out_shape=out_shapes,
        grid=grid,
        in_specs=in_specs,
        out_specs=out_specs,
        compiler_params=pltpu.CompilerParams(dimension_semantics=("parallel",)),
    )(obs, *args)


# -----------------------------------------------------------------------------
# Parameter construction & packing (deterministic, synthetic)
# -----------------------------------------------------------------------------
def _init_mlp(key, dims):
    """dims = [d0, d1, d2, d3] -> {w1,b1,w2,b2,w3,b3} (weights (in, out), f32)."""
    params = {}
    for i in range(3):
        key, kw = jax.random.split(key)
        fan_in = dims[i]
        w = jax.random.normal(kw, (fan_in, dims[i + 1]), jnp.float32) / jnp.sqrt(
            jnp.float32(fan_in)
        )
        b = jnp.zeros((1, dims[i + 1]), jnp.float32)
        params[f"w{i + 1}"] = w
        params[f"b{i + 1}"] = b
    return params


def _init_critic_stack(key, num_critics, dims):
    """Per-critic params stacked along a leading critic axis."""
    stacks = None
    for _ in range(num_critics):
        key, kc = jax.random.split(key)
        p = _init_mlp(kc, dims)
        if stacks is None:
            stacks = {k: [v] for k, v in p.items()}
        else:
            for k, v in p.items():
                stacks[k].append(v)
    return {k: jnp.stack(v, axis=0) for k, v in stacks.items()}


def _pack_critic_stack(stacked, obs_dim):
    """Pack a (C, ...) critic stack into lane-concatenated / block-diag weights.

    layer1 (d_in, C*H) split into obs/act rows; layer2 block-diag (C*H, C*H);
    layer3 is stored PRE-TRANSPOSED (C, C*H) so the kernel's trans-B dot_general
    produces a lane-dense (C, batch) Q block with no transpose anywhere.
    """
    w1 = jnp.concatenate(list(stacked["w1"]), axis=1)            # (d_in, C*H)
    b1 = jnp.concatenate(list(stacked["b1"]), axis=1)            # (1,   C*H)
    w2 = jax.scipy.linalg.block_diag(*list(stacked["w2"]))       # (C*H, C*H)
    b2 = jnp.concatenate(list(stacked["b2"]), axis=1)            # (1,   C*H)
    w3 = jax.scipy.linalg.block_diag(*list(stacked["w3"]))       # (C*H, C)
    b3 = jnp.concatenate(list(stacked["b3"]), axis=1)            # (1,   C)
    return {
        "w1_obs": w1[:obs_dim],
        "w1_act": w1[obs_dim:],
        "b1": b1,
        "w2": w2,
        "b2": b2,
        "w3t": w3.T,      # (C, C*H)
        "b3t": b3.T,      # (C, 1)
    }


def _to_mxu_dtype(params):
    """Weights -> bf16 (MXU operands / halved DMA); biases stay f32."""
    return {k: (v.astype(COMPUTE_DTYPE) if "w" in k else v) for k, v in params.items()}


# -----------------------------------------------------------------------------
# ActorCritic wrapper
# -----------------------------------------------------------------------------
class ActorCritic:
    def __init__(self, actor_params, critic_params, target_critic_params, obs_dim):
        self.obs_dim = obs_dim
        self.num_critics = critic_params["w1"].shape[0]

        self.actor_params = _to_mxu_dtype(actor_params)
        self.critic_packed = _to_mxu_dtype(_pack_critic_stack(critic_params, obs_dim))
        self.target_critic_packed = _to_mxu_dtype(
            _pack_critic_stack(target_critic_params, obs_dim)
        )

        # critics + target critics packed side by side -> a single pallas_call
        # evaluates both ensembles.  Order (critics first, targets second) must
        # match the [:C]/[C:] split below.
        combined = {
            k: jnp.concatenate([critic_params[k], target_critic_params[k]], axis=0)
            for k in critic_params
        }
        all_packed = _pack_critic_stack(combined, obs_dim)
        assert all_packed["w3t"].shape[0] == 2 * self.num_critics
        self.all_critic_packed = _to_mxu_dtype(all_packed)

        # Fused packing: critic obs-path layer-1 first (lanes [:2C*H], tile-
        # aligned), actor layer-1 second (lanes [2C*H:]), shared first matmul.
        fused = {
            "w1cat": jnp.concatenate([all_packed["w1_obs"], actor_params["w1"]], axis=1),
            "b1cat": jnp.concatenate([all_packed["b1"], actor_params["b1"]], axis=1),
            "cw1a": all_packed["w1_act"],
            "cw2": all_packed["w2"], "cb2": all_packed["b2"],
            "cw3t": all_packed["w3t"], "cb3t": all_packed["b3t"],
            "aw2": actor_params["w2"], "ab2": actor_params["b2"],
            "aw3": actor_params["w3"], "ab3": actor_params["b3"],
        }
        self.fused_params = _to_mxu_dtype(fused)

    def get_actions(self, observations, train=False):
        # train flag kept for API parity; deterministic (mean) actions either way.
        # TODO(synk): reference actor distribution (torch.distributions) is abstract;
        # sampling noise is not modeled here.
        return actor_forward(observations, self.actor_params)

    def get_q_values(self, observations, actions):
        return packed_critic_forward(observations, actions, self.critic_packed)

    def get_target_q_values(self, observations, actions):
        return packed_critic_forward(observations, actions, self.target_critic_packed)

    def get_all_q_values(self, observations, actions):
        """Critics + target critics in ONE pallas_call: ((C,B), (C,B))."""
        q_all = packed_critic_forward(observations, actions, self.all_critic_packed)
        return q_all[: self.num_critics], q_all[self.num_critics:]

    def __call__(self, observations):
        # Reference forward() raises NotImplementedError; we expose the natural
        # composition (actions + critic Q + target-critic Q of those actions),
        # fused into ONE pallas_call so actions never leave VMEM.
        actions, q_all = fused_actor_critic_forward(observations, self.fused_params)
        return actions, q_all[: self.num_critics], q_all[self.num_critics:]

    def __repr__(self):
        return f"{self.__class__.__name__}"


# -----------------------------------------------------------------------------
# Pure-numpy reference (for correctness check of the packing / bf16 path)
# -----------------------------------------------------------------------------
def _f32(x):
    return np.asarray(jnp.asarray(x, jnp.float32))


def _quantize_weights_like_kernel(params):
    """bf16-roundtrip weights so the reference matches the kernel's storage."""
    return {k: (v.astype(jnp.bfloat16).astype(jnp.float32) if "w" in k else v)
            for k, v in params.items()}


def _np_actor(obs, p):
    h1 = np.maximum(obs @ _f32(p["w1"]) + _f32(p["b1"]), 0.0)
    h2 = np.maximum(h1 @ _f32(p["w2"]) + _f32(p["b2"]), 0.0)
    return np.tanh(h2 @ _f32(p["w3"]) + _f32(p["b3"]))


def _np_critics(obs, act, stacked):
    x = np.concatenate([obs, act], axis=-1)
    qs = []
    for c in range(stacked["w1"].shape[0]):
        h1 = np.maximum(x @ _f32(stacked["w1"][c]) + _f32(stacked["b1"][c]), 0.0)
        h2 = np.maximum(h1 @ _f32(stacked["w2"][c]) + _f32(stacked["b2"][c]), 0.0)
        qs.append((h2 @ _f32(stacked["w3"][c]) + _f32(stacked["b3"][c]))[:, 0])
    return np.stack(qs, axis=0)


# -----------------------------------------------------------------------------
# Main
# -----------------------------------------------------------------------------
if __name__ == "__main__":
    batch = 8          # multiple of 8 (sublanes)
    obs_dim = 16
    action_dim = 8
    hidden = 32
    num_critics = 2

    key = jax.random.PRNGKey(0)
    k_obs, k_actor, k_critic, k_target, k_big = jax.random.split(key, 5)

    observations = jax.random.normal(k_obs, (batch, obs_dim), jnp.float32)

    actor_params = _init_mlp(k_actor, [obs_dim, hidden, hidden, action_dim])
    critic_params = _init_critic_stack(
        k_critic, num_critics, [obs_dim + action_dim, hidden, hidden, 1]
    )
    target_critic_params = _init_critic_stack(
        k_target, num_critics, [obs_dim + action_dim, hidden, hidden, 1]
    )

    model = ActorCritic(actor_params, critic_params, target_critic_params, obs_dim)

    # ---- small batch (gridless path) ----
    actions = model.get_actions(observations)
    q_values = model.get_q_values(observations, actions)
    target_q_values = model.get_target_q_values(observations, actions)
    q_both, tq_both = model.get_all_q_values(observations, actions)
    fused_actions, fused_q, fused_tq = model(observations)

    jax.block_until_ready(
        (actions, q_values, target_q_values, q_both, tq_both,
         fused_actions, fused_q, fused_tq)
    )

    assert actions.shape == (batch, action_dim)
    assert q_values.shape == (num_critics, batch)
    assert target_q_values.shape == (num_critics, batch)
    assert q_both.shape == (num_critics, batch)
    assert tq_both.shape == (num_critics, batch)
    assert fused_actions.shape == (batch, action_dim)
    assert fused_q.shape == (num_critics, batch)
    assert fused_tq.shape == (num_critics, batch)

    # Numerical checks vs numpy (weights bf16-roundtripped like the kernel;
    # remaining error is activation rounding + MXU summation order).
    critic_q = _quantize_weights_like_kernel(critic_params)
    target_q = _quantize_weights_like_kernel(target_critic_params)

    obs_np = np.asarray(observations)
    ref_actions = _np_actor(obs_np, model.actor_params)
    act_np = np.asarray(actions)
    ref_q = _np_critics(obs_np, act_np, critic_q)
    ref_tq = _np_critics(obs_np, act_np, target_q)

    assert np.allclose(act_np, ref_actions, atol=5e-2, rtol=5e-2)
    assert np.allclose(np.asarray(q_values), ref_q, atol=5e-2, rtol=5e-2)
    assert np.allclose(np.asarray(target_q_values), ref_tq, atol=5e-2, rtol=5e-2)
    assert np.allclose(np.asarray(q_both), ref_q, atol=5e-2, rtol=5e-2)
    assert np.allclose(np.asarray(tq_both), ref_tq, atol=5e-2, rtol=5e-2)

    fused_act_np = np.asarray(fused_actions)
    assert np.allclose(fused_act_np, ref_actions, atol=5e-2, rtol=5e-2)
    assert np.allclose(np.asarray(fused_q),
                       _np_critics(obs_np, fused_act_np, critic_q),
                       atol=5e-2, rtol=5e-2)
    assert np.allclose(np.asarray(fused_tq),
                       _np_critics(obs_np, fused_act_np, target_q),
                       atol=5e-2, rtol=5e-2)

    # ---- large batch (exercises the batch grid / megacore path) ----
    big_batch = 256
    obs_big = jax.random.normal(k_big, (big_batch, obs_dim), jnp.float32)
    actions_big = model.get_actions(obs_big)
    q_big = model.get_q_values(obs_big, actions_big)
    fa_big, fq_big, ftq_big = model(obs_big)
    jax.block_until_ready((actions_big, q_big, fa_big, fq_big, ftq_big))

    assert actions_big.shape == (big_batch, action_dim)
    assert q_big.shape == (num_critics, big_batch)
    assert fa_big.shape == (big_batch, action_dim)
    assert fq_big.shape == (num_critics, big_batch)
    assert ftq_big.shape == (num_critics, big_batch)

    obs_big_np = np.asarray(obs_big)
    ref_actions_big = _np_actor(obs_big_np, model.actor_params)
    assert np.allclose(np.asarray(actions_big), ref_actions_big, atol=5e-2, rtol=5e-2)
    assert np.allclose(np.asarray(q_big),
                       _np_critics(obs_big_np, np.asarray(actions_big), critic_q),
                       atol=5e-2, rtol=5e-2)
    assert np.allclose(np.asarray(fa_big), ref_actions_big, atol=5e-2, rtol=5e-2)
    assert np.allclose(np.asarray(fq_big),
                       _np_critics(obs_big_np, np.asarray(fa_big), critic_q),
                       atol=5e-2, rtol=5e-2)
    assert np.allclose(np.asarray(ftq_big),
                       _np_critics(obs_big_np, np.asarray(fa_big), target_q),
                       atol=5e-2, rtol=5e-2)

    print("KERNEL_OK")
</pallas_src>

<mosaic_0001>
module attributes {stable_mosaic.version = 11 : i64} {
  func.func @_actor_kernel(%arg0: memref<8x16xf32, #tpu.memory_space<vmem>>, %arg1: memref<16x32xbf16, #tpu.memory_space<vmem>>, %arg2: memref<1x32xf32, #tpu.memory_space<vmem>>, %arg3: memref<32x32xbf16, #tpu.memory_space<vmem>>, %arg4: memref<1x32xf32, #tpu.memory_space<vmem>>, %arg5: memref<32x8xbf16, #tpu.memory_space<vmem>>, %arg6: memref<1x8xf32, #tpu.memory_space<vmem>>, %arg7: memref<8x8xf32, #tpu.memory_space<vmem>>) attributes {dimension_semantics = [], scalar_prefetch = 0 : i64, scratch_operands = 0 : i64, tpu.core_type = #tpu.core_type<tc>} {
    %c0 = arith.constant 0 : index
    %c0_0 = arith.constant 0 : index
    %0 = vector.load %arg0[%c0, %c0_0] : memref<8x16xf32, #tpu.memory_space<vmem>>, vector<8x16xf32>
    %1 = arith.truncf %0 : vector<8x16xf32> to vector<8x16xbf16>
    %c0_1 = arith.constant 0 : index
    %c0_2 = arith.constant 0 : index
    %2 = vector.load %arg1[%c0_1, %c0_2] : memref<16x32xbf16, #tpu.memory_space<vmem>>, vector<16x32xbf16>
    %cst = arith.constant dense<0.000000e+00> : vector<8x32xf32>
    %3 = tpu.matmul %1, %2, %cst {dimension_numbers = #tpu.dot_dimension_numbers<[1], [0], [0], [1], [0, 0, 1, 1], [], []>} : vector<8x16xbf16>, vector<16x32xbf16>, vector<8x32xf32> -> vector<8x32xf32>
    %c0_3 = arith.constant 0 : index
    %c0_4 = arith.constant 0 : index
    %4 = vector.load %arg2[%c0_3, %c0_4] : memref<1x32xf32, #tpu.memory_space<vmem>>, vector<1x32xf32>
    %5 = vector.broadcast %4 : vector<1x32xf32> to vector<8x32xf32>
    %6 = arith.addf %3, %5 : vector<8x32xf32>
    %cst_5 = arith.constant 0.000000e+00 : f32
    %7 = vector.broadcast %cst_5 : f32 to vector<8x32xf32>
    %8 = arith.maximumf %6, %7 : vector<8x32xf32>
    %9 = arith.truncf %8 : vector<8x32xf32> to vector<8x32xbf16>
    %c0_6 = arith.constant 0 : index
    %c0_7 = arith.constant 0 : index
    %10 = vector.load %arg3[%c0_6, %c0_7] : memref<32x32xbf16, #tpu.memory_space<vmem>>, vector<32x32xbf16>
    %cst_8 = arith.constant dense<0.000000e+00> : vector<8x32xf32>
    %11 = tpu.matmul %9, %10, %cst_8 {dimension_numbers = #tpu.dot_dimension_numbers<[1], [0], [0], [1], [0, 0, 1, 1], [], []>} : vector<8x32xbf16>, vector<32x32xbf16>, vector<8x32xf32> -> vector<8x32xf32>
    %c0_9 = arith.constant 0 : index
    %c0_10 = arith.constant 0 : index
    %12 = vector.load %arg4[%c0_9, %c0_10] : memref<1x32xf32, #tpu.memory_space<vmem>>, vector<1x32xf32>
    %13 = vector.broadcast %12 : vector<1x32xf32> to vector<8x32xf32>
    %14 = arith.addf %11, %13 : vector<8x32xf32>
    %cst_11 = arith.constant 0.000000e+00 : f32
    %15 = vector.broadcast %cst_11 : f32 to vector<8x32xf32>
    %16 = arith.maximumf %14, %15 : vector<8x32xf32>
    %17 = arith.truncf %16 : vector<8x32xf32> to vector<8x32xbf16>
    %c0_12 = arith.constant 0 : index
    %c0_13 = arith.constant 0 : index
    %18 = vector.load %arg5[%c0_12, %c0_13] : memref<32x8xbf16, #tpu.memory_space<vmem>>, vector<32x8xbf16>
    %cst_14 = arith.constant dense<0.000000e+00> : vector<8x8xf32>
    %19 = tpu.matmul %17, %18, %cst_14 {dimension_numbers = #tpu.dot_dimension_numbers<[1], [0], [0], [1], [0, 0, 1, 1], [], []>} : vector<8x32xbf16>, vector<32x8xbf16>, vector<8x8xf32> -> vector<8x8xf32>
    %c0_15 = arith.constant 0 : index
    %c0_16 = arith.constant 0 : index
    %20 = vector.load %arg6[%c0_15, %c0_16] : memref<1x8xf32, #tpu.memory_space<vmem>>, vector<1x8xf32>
    %21 = vector.broadcast %20 : vector<1x8xf32> to vector<8x8xf32>
    %22 = arith.addf %19, %21 : vector<8x8xf32>
    %23 = math.tanh %22 : vector<8x8xf32>
    %c0_17 = arith.constant 0 : index
    %c0_18 = arith.constant 0 : index
    %24 = vector.load %arg7[%c0_17, %c0_18] : memref<8x8xf32, #tpu.memory_space<vmem>>, vector<8x8xf32>
    tpu.vector_store %arg7[%c0_17, %c0_18], %23 {strides = array<i32>} : memref<8x8xf32, #tpu.memory_space<vmem>>, vector<8x8xf32>,
    return
  }
}

</mosaic_0001>

<bundles_post_ra>
// kernel: tpu_custom_call.1
= control target key start
LH: loop header
LB: loop body
LE: loop exit
PB: predicated region body
PF: predicated region fallthrough
CT: control target
= control target key end

     0   :  { %12 = vsyncpa [#allocation3], 0  ;;  %s469_s0 = inlined_call_operand.vmem [shape: f32[8,16], index: 0, kind: input, shape index: {}]   ;;  %s470_s1 = inlined_call_operand.hbm [shape: bf16[16,32], index: 1, kind: input, shape index: {}]   ;;  %s471_s2 = inlined_call_operand.vmem [shape: f32[1,32], index: 2, kind: input, shape index: {}]   ;;  %s472_s3 = inlined_call_operand.vmem [shape: bf16[32,32], index: 3, kind: input, shape index: {}]   ;;  %s473_s4 = inlined_call_operand.hbm [shape: f32[1,32], index: 4, kind: input, shape index: {}]   ;;  %s474_s5 = inlined_call_operand.vmem [shape: bf16[32,8], index: 5, kind: input, shape index: {}]   ;;  %s475_s6 = inlined_call_operand.vmem [shape: f32[1,8], index: 6, kind: input, shape index: {}]   ;;  %s476_s7 = inlined_call_operand.hbm [shape: f32[8,8], index: 7, kind: output, shape index: {}]  }
   0x1   :  { %13 = vsyncpa [#allocation6], 0 }
   0x2   :  { %14 = vsyncpa [#allocation4], 0  ;;  %s392_s24 = smov [#allocation2]  }
   0x3   :  { %s22_s25 = sshll.u32 %s392_s24, 4  ;;  %s23_s25 = int_to_ptr.vmem [resolvable:$true] %s22_s25 }
   0x4   :  { %s334_s26 = scalar_lea.vmem %s23_s25, 128  ;;  %p339_p1 = scmp.lt.s32.totalorder %s23_s25, %s23_s25 }
   0x5   :  { %p335_p0 = scmp.ne.s32.totalorder %s23_s25, %s334_s26  ;;  %p340_p2 = scmp.lt.s32.totalorder %s334_s26, %s334_s26 }
   0x7   :  { %p341_p3 = por %p340_p2, %p339_p1 }
   0x9   :  { %p342_p4 = pnand %p341_p3, %p335_p0 }
   0xb   :  { %345 = shalt.err (!%p342_p4)
}
   0xc   :  { %s393_s27 = smov 64   ;;  %s394_s28 = smov 4  }
   0xd   :  { %28 = dma.hbm_to_vmem [thread:$0]  %s470_s1, 128, %s23_s25, [#allocation3], %s393_s27, %s393_s27, %s394_s28  }
   0xe   :  { %s395_s8 = smov [#allocation5]  }
   0xf   :  { %s39_s9 = sshll.u32 %s395_s8, 4  ;;  %s40_s9 = int_to_ptr.vmem [resolvable:$true] %s39_s9 }
  0x10   :  { %s354_s10 = scalar_lea.vmem %s40_s9, 16  ;;  %s358_s11 = scalar_lea.vmem %s40_s9, 32 }
  0x11   :  { %p355_p5 = scmp.ne.s32.totalorder %s40_s9, %s354_s10  ;;  %p359_p6 = scmp.lt.s32.totalorder %s40_s9, %s40_s9 }
  0x12   :  { %p360_p7 = scmp.lt.s32.totalorder %s358_s11, %s354_s10 }
  0x14   :  { %p361_p8 = por %p360_p7, %p359_p6 }
  0x16   :  { %p362_p9 = pnand %p361_p8, %p355_p5 }
  0x18   :  { %365 = shalt.err (!%p362_p9)
}
  0x19   :  { %42 = dma.hbm_to_vmem [thread:$0]  %s473_s4, 16, %s40_s9, [#allocation6]  }
  0x1a   :  { %386 = dma.done.wait [#allocation3], 128  }
  0x1b   :  { %387 = vsyncadd [#allocation3], 4294967168 }
  0x1c   :  { %388 = dma.done.wait [#allocation6], 16  }
  0x1d   :  { %389 = vsyncadd [#allocation6], 4294967280  ;;  %v396_v0 = vmov 0.0   ;;  %vm397_vm0 = vmmov 0   ;;  %v319_v1 = vld [vmem:[#allocation2] sm:$0xff]   ;;  %vm71_vm1 = vcmask 130048  }
  0x1e   :  { %290 = vmatprep.subr.bf16.mxu0 %v396_v0  ;;  %292 = vmatprep.mubr.msk.bf16.mxu0 %vm397_vm0, %v396_v0  ;;  %v54_v2 = vld [vmem:[%s469_s0] sm:$0xff]  ;;  %v320_v4 = vld [vmem:[%s472_s3 + $0x8] sm:$0xff]   ;;  %vm140_vm2 = vcmask 261120   ;;  %vm253_vm3 = vcmask 64512  }
  0x1f   :  { %296 = vmatprep.subr.bf16.mxu1 %v396_v0  ;;  %300 = vmatprep.mubr.msk.bf16.mxu1 %vm397_vm0, %v396_v0  ;;  %v55_v3 = vpack.c.bf16 %v54_v2, %v54_v2  ;;  %v321_v5 = vld [vmem:[%s472_s3] sm:$0xff]   ;;  %v322_v6 = vld [vmem:[%s474_s5 + $0x8] sm:$0xff]  }
  0x20   :  { %291 = vmatpush3.bf16.msra.mxu0 %v319_v1  ;;  %297 = vmatpush3.bf16.msra.mxu1 %v320_v4  ;;  %v271_v7 = vld [vmem:[%s471_s2] ss:$0 sm:$0xff]  ;;  %v274_v16 = vld [vmem:[#allocation5] ss:$0 sm:$0xff] }
  0x21   :  { %304 = vmatprep.subr.bf16.mxu0 %v396_v0  ;;  %298 = vmatprep.subr.bf16.mxu1 %v396_v0  ;;  %v323_v15 = vld [vmem:[%s474_s5] sm:$0xff]   ;;  %s398_s5 = smov [#allocation7]  }
  0x22   :  { %v278_v24 = vld [vmem:[%s475_s6] ss:$0 sm:$0xff]  ;;  %s261_s23 = sshll.u32 %s398_s5, 4  ;;  %s262_s23 = int_to_ptr.vmem [resolvable:$true] %s261_s23 }
  0x23   :  { %293 = vmatmul.mubr.msk.bf16.vlgmr.msra.gmra.mxu0 %vm71_vm1, %v55_v3  ;;  %s366_s24 = scalar_lea.vmem %s262_s23, 128  ;;  %p371_p11 = scmp.lt.s32.totalorder %s262_s23, %s262_s23 }
  0x24   :  { %308 = vmatprep.mubr.msk.bf16.mxu0 %vm397_vm0, %v396_v0  ;;  %299 = vmatpush3.bf16.msra.mxu1 %v321_v5  ;;  %p367_p10 = scmp.ne.s32.totalorder %s262_s23, %s366_s24  ;;  %p372_p12 = scmp.lt.s32.totalorder %s366_s24, %s366_s24 }
  0x25   :  { %305 = vmatpush3.bf16.msra.mxu0 %v322_v6 }
  0x26   :  { %306 = vmatprep.subr.bf16.mxu0 %v396_v0  ;;  %p373_p13 = por %p372_p12, %p371_p11 }
  0x28   :  { %p374_p0 = pnand %p373_p13, %p367_p10 }
  0x29   :  { %307 = vmatpush3.bf16.msra.mxu0 %v323_v15 }
  0xe3   :  { %v109_v8 = vpop.f32.mrf.mxu0 }
  0xe4   :  { %v110_v9 = vadd.f32 %v271_v7, %v109_v8 }
  0xe5   :  { %v294_v10 = vpop.f32.mrf.mxu0 }
  0xe6   :  { %v115_v11 = vmax.f32 %v110_v9, 0.0 }
  0xe7   :  { %v112_v12 = vpop.f32.mrf.mxu0 }
  0xe8   :  { %v116_v13 = vpack.c.bf16 %v115_v11, %v115_v11 }
  0xe9   :  { %v295_v14 = vpop.f32.mrf.mxu0 }
  0xea   :  { %301 = vmatmul.mubr.msk.bf16.vlgmr.msra.gmra.mxu1 %vm140_vm2, %v116_v13 }
 0x1aa   :  { %v178_v17 = vpop.f32.mrf.mxu1 }
 0x1ab   :  { %v179_v18 = vadd.f32 %v274_v16, %v178_v17 }
 0x1ac   :  { %v302_v19 = vpop.f32.mrf.mxu1 }
 0x1ad   :  { %v184_v20 = vmax.f32 %v179_v18, 0.0 }
 0x1ae   :  { %v181_v21 = vpop.f32.mrf.mxu1 }
 0x1af   :  { %v185_v22 = vpack.c.bf16 %v184_v20, %v184_v20 }
 0x1b0   :  { %v303_v23 = vpop.f32.mrf.mxu1 }
 0x1b1   :  { %309 = vmatmul.mubr.msk.bf16.vlgmr.msra.gmra.mxu0 %vm140_vm2, %v185_v22 }
 0x271   :  { %v246_v25 = vpop.f32.mrf.mxu0 }
 0x272   :  { %v247_v26 = vadd.f32 %v278_v24, %v246_v25 }
 0x273   :  { %v310_v27 = vpop.f32.mrf.mxu0 }
 0x274   :  { %324 = vtanh.f32 %v247_v26 }
 0x275   :  { %v249_v28 = vpop.f32.mrf.mxu0 }
 0x277   :  { %v311_v29 = vpop.f32.mrf.mxu0 }
 0x281   :  { %v325_v30 = vpop.eup %324 }
 0x282   :  { %254 = vst.msk [vmem:[#allocation7] sm:$0xff] %vm253_vm3, %v325_v30 }
 0x283   :  { %377 = shalt.err (!%p374_p0)
}
 0x284   :  { %264 = dma.vmem_to_hbm [thread:$0]  %s262_s23, 128, %s476_s7, [#allocation4]  }
 0x285   :  { %390 = dma.done.wait [#allocation4], 128  }
 0x286   :  { %391 = vsyncadd [#allocation4], 4294967168 }
 0x287   :  { %268 = vsyncpa [#allocation3], 1 }
 0x288   :  { %269 = vsyncpa [#allocation6], 1 }
 0x289   :  { %270 = vsyncpa [#allocation4], 1 }

</bundles_post_ra>
